<compile_context>
chip_gen: v7x
topology: tpu7x:2x2x1
jax: 0.10.0
libtpu: 0.0.40
codegen_flags: <defaults>
</compile_context>

<pallas_src>
import functools

import jax
import jax.numpy as jnp
from jax import lax
from jax.experimental import pallas as pl
from jax.experimental.pallas import tpu as pltpu

H_HIDDEN = 256  # hidden width of out_{p,v,a}1 in the reference module


def _head_kernel(x_ref, w1_ref, b1_ref, w2_ref, b2_ref, out_ref, *, n_classes):
    """Fused p/v/a-base head.

    x   : (tn, F)
    w1  : (F, 3H)   = [w1p | w1v | w1a_x]        (concatenated first layers)
    b1  : (1, 3H)
    w2  : (3H, 3C)  = blockdiag(w2p, w2v, w2a)   (fused second layers)
    b2  : (1, 3C)
    out : (tn, 3C)  = [sigmoid(p_pre) | v | a_base]
    """
    x = x_ref[...]
    h = jnp.dot(x, w1_ref[...], preferred_element_type=jnp.float32) + b1_ref[...]
    y = jnp.dot(h, w2_ref[...], preferred_element_type=jnp.float32) + b2_ref[...]
    # sigmoid only on the first C columns (the p head); EUP op, lane-masked select.
    col = lax.broadcasted_iota(jnp.int32, y.shape, 1)
    out_ref[...] = jnp.where(col < n_classes, jax.nn.sigmoid(y), y)


def _pick_row_tile(n):
    """Largest row tile that keeps the per-step footprint small; full array for toy N."""
    if n <= 2048:
        return n
    for t in (2048, 1024, 512, 256, 128, 64, 32, 16, 8):
        if n % t == 0:
            return t
    return n


def init_params(key, n_embedding_channels, n_edge_features_in, n_edge_classes):
    """Deterministic init mirroring the nn.Linear shapes in __init__."""
    E = n_embedding_channels + 1            # module appends the round_n channel
    F = E + n_edge_features_in
    H, C = H_HIDDEN, n_edge_classes

    def linear(k, fan_in, fan_out):
        k1, k2 = jax.random.split(k)
        bound = 1.0 / jnp.sqrt(jnp.float32(fan_in))
        w = jax.random.uniform(k1, (fan_in, fan_out), jnp.float32, -bound, bound)
        b = jax.random.uniform(k2, (1, fan_out), jnp.float32, -bound, bound)
        return w, b

    ks = jax.random.split(key, 6)
    return {
        "p1": linear(ks[0], F, H), "p2": linear(ks[1], H, C),
        "v1": linear(ks[2], F, H), "v2": linear(ks[3], H, C),
        "a1": linear(ks[4], F + 1, H), "a2": linear(ks[5], H, C),
    }


@functools.partial(jax.jit, static_argnames=("exp_steps",))
def dueling_head_forward(edge_features, edge_features_1d, action_behav, params,
                         key, exp_steps=4, p_sigma=0.2):
    N = edge_features.shape[0]
    x = jnp.concatenate([edge_features, edge_features_1d], axis=-1).astype(jnp.float32)
    ab = action_behav[:, None].astype(jnp.float32)                      # (N, 1)
    F_in = x.shape[1]
    H = H_HIDDEN

    w1p, b1p = params["p1"]; w2p, b2p = params["p2"]
    w1v, b1v = params["v1"]; w2v, b2v = params["v2"]
    w1a, b1a = params["a1"]; w2a, b2a = params["a2"]
    C = w2p.shape[1]
    w1a_x, w1a_s = w1a[:F_in, :], w1a[F_in:, :]                         # (F,H), (1,H)

    # Fused first layer: one (F, 3H) matmul (256-lane-aligned head offsets).
    w1_cat = jnp.concatenate([w1p, w1v, w1a_x], axis=-1)                # (F, 3H)
    b1_cat = jnp.concatenate([b1p, b1v, b1a], axis=-1)                  # (1, 3H)
    # Fused second layer: block-diagonal (3H, 3C) matmul.
    z = jnp.zeros((H, C), jnp.float32)
    w2_bd = jnp.block([[w2p, z, z], [z, w2v, z], [z, z, w2a]])          # (3H, 3C)
    b2_cat = jnp.concatenate([b2p, b2v, b2a], axis=-1)                  # (1, 3C)

    tn = _pick_row_tile(N)
    grid = (N // tn,)
    kernel = functools.partial(_head_kernel, n_classes=C)

    out = pl.pallas_call(
        kernel,
        grid=grid,
        in_specs=[
            pl.BlockSpec((tn, F_in), lambda i: (i, 0)),      # x tile
            pl.BlockSpec((F_in, 3 * H), lambda i: (0, 0)),   # resident weights
            pl.BlockSpec((1, 3 * H), lambda i: (0, 0)),
            pl.BlockSpec((3 * H, 3 * C), lambda i: (0, 0)),
            pl.BlockSpec((1, 3 * C), lambda i: (0, 0)),
        ],
        out_specs=pl.BlockSpec((tn, 3 * C), lambda i: (i, 0)),
        out_shape=jax.ShapeDtypeStruct((N, 3 * C), jnp.float32),
        compiler_params=pltpu.CompilerParams(
            dimension_semantics=("parallel",)),
    )(x, w1_cat, b1_cat, w2_bd, b2_cat)

    p = out[:, 0:C]                 # sigmoid(out_p2(out_p1(x)))
    v = out[:, C:2 * C]             # out_v2(out_v1(x))
    a_base = out[:, 2 * C:3 * C]    # advantage head evaluated at action = 0

    # Advantage head is affine in the action scalar: a(s) = a_base + s * k.
    k_adv = jnp.dot(w1a_s, w2a)                                         # (1, C)
    a = a_base + ab * k_adv

    # TruncNorm(loc=p, scale=p_sigma, a=0, b=1) sampling via inverse-CDF.
    # NOTE: broadcasting below assumes n_edge_classes == 1 (as in the reference usage).
    # TODO(synk): TruncNorm's density_eval_range evaluation is not needed here and is omitted.
    loc = p
    lower = (0.0 - loc) / p_sigma
    upper = (1.0 - loc) / p_sigma
    k1, k2 = jax.random.split(key)
    z_s = jax.random.truncated_normal(k1, lower, upper, shape=(N, exp_steps))
    samples = loc + p_sigma * z_s                                       # (N, exp_steps)
    z_p = jax.random.truncated_normal(k2, lower, upper, shape=(N, C))
    sample_prime = loc + p_sigma * z_p                                  # (N, C)

    # exp_adv = mean_i a(sample_i) = a_base + mean(samples) * k   (exact by linearity)
    exp_adv = a_base + jnp.mean(samples, axis=1, keepdims=True) * k_adv
    q = v + a - exp_adv
    a_prime = a_base + sample_prime * k_adv
    q_prime = v + a_prime - exp_adv        # v_prime == v (same weights, same input)

    # Mirrors the PyTorch return: (p, q, v, a, p_dis, sampled_action, q_prime);
    # p_dis is a distribution object whose parameters are (p, p_sigma).
    return (jnp.squeeze(p), jnp.squeeze(q), jnp.squeeze(v), jnp.squeeze(a),
            jnp.squeeze(sample_prime), jnp.squeeze(q_prime))


if __name__ == "__main__":
    key = jax.random.PRNGKey(0)

    n_embedding_channels = 15    # module uses n_embedding_channels + 1 = 16 internally
    n_edge_features_in = 8
    n_edge_classes = 1
    exp_steps = 4
    p_sigma = 0.2
    N = 64                       # number of graph edges

    kp, kf, kf1d, ka, ks = jax.random.split(key, 5)
    params = init_params(kp, n_embedding_channels, n_edge_features_in, n_edge_classes)

    E = n_embedding_channels + 1
    # TODO(synk): deterministic stand-in for the undefined SpVecsUnet/NodeConv/EdgeConv output.
    edge_features = jax.random.normal(kf, (N, E), jnp.float32)
    edge_features_1d = jax.random.normal(kf1d, (N, n_edge_features_in), jnp.float32)
    action_behav = jax.random.uniform(ka, (N,), jnp.float32)

    outs = dueling_head_forward(edge_features, edge_features_1d, action_behav,
                                params, ks, exp_steps=exp_steps, p_sigma=p_sigma)
    jax.block_until_ready(outs)
    print("KERNEL_OK")
</pallas_src>

<mosaic_0001>
module attributes {stable_mosaic.version = 11 : i64} {
  func.func @_head_kernel(%arg0: i32, %arg1: memref<64x24xf32, #tpu.memory_space<vmem>>, %arg2: memref<24x768xf32, #tpu.memory_space<vmem>>, %arg3: memref<1x768xf32, #tpu.memory_space<vmem>>, %arg4: memref<768x3xf32, #tpu.memory_space<vmem>>, %arg5: memref<1x3xf32, #tpu.memory_space<vmem>>, %arg6: memref<64x3xf32, #tpu.memory_space<vmem>>) attributes {dimension_semantics = [#tpu.dimension_semantics<parallel>], iteration_bounds = array<i64: 1>, scalar_prefetch = 0 : i64, scratch_operands = 0 : i64, tpu.core_type = #tpu.core_type<tc>, window_params = [{transform_indices = @transform_0, window_bounds = array<i64: 64, 24>}, {pipeline_mode = #tpu.pipeline_mode<synchronous>, transform_indices = @transform_1, window_bounds = array<i64: 24, 768>}, {pipeline_mode = #tpu.pipeline_mode<synchronous>, transform_indices = @transform_2, window_bounds = array<i64: 1, 768>}, {pipeline_mode = #tpu.pipeline_mode<synchronous>, transform_indices = @transform_3, window_bounds = array<i64: 768, 3>}, {pipeline_mode = #tpu.pipeline_mode<synchronous>, transform_indices = @transform_4, window_bounds = array<i64: 1, 3>}, {transform_indices = @transform_5, window_bounds = array<i64: 64, 3>}]} {
    %c0 = arith.constant 0 : index
    %c0_0 = arith.constant 0 : index
    %0 = vector.load %arg1[%c0, %c0_0] : memref<64x24xf32, #tpu.memory_space<vmem>>, vector<64x24xf32>
    %c0_1 = arith.constant 0 : index
    %c0_2 = arith.constant 0 : index
    %1 = vector.load %arg2[%c0_1, %c0_2] : memref<24x768xf32, #tpu.memory_space<vmem>>, vector<24x768xf32>
    %cst = arith.constant dense<0.000000e+00> : vector<64x768xf32>
    %2 = tpu.matmul %0, %1, %cst {dimension_numbers = #tpu.dot_dimension_numbers<[1], [0], [0], [1], [0, 0, 1, 1], [], []>} : vector<64x24xf32>, vector<24x768xf32>, vector<64x768xf32> -> vector<64x768xf32>
    %c0_3 = arith.constant 0 : index
    %c0_4 = arith.constant 0 : index
    %3 = vector.load %arg3[%c0_3, %c0_4] : memref<1x768xf32, #tpu.memory_space<vmem>>, vector<1x768xf32>
    %4 = vector.broadcast %3 : vector<1x768xf32> to vector<64x768xf32>
    %5 = arith.addf %2, %4 : vector<64x768xf32>
    %c0_5 = arith.constant 0 : index
    %c0_6 = arith.constant 0 : index
    %6 = vector.load %arg4[%c0_5, %c0_6] : memref<768x3xf32, #tpu.memory_space<vmem>>, vector<768x3xf32>
    %cst_7 = arith.constant dense<0.000000e+00> : vector<64x3xf32>
    %7 = tpu.matmul %5, %6, %cst_7 {dimension_numbers = #tpu.dot_dimension_numbers<[1], [0], [0], [1], [0, 0, 1, 1], [], []>} : vector<64x768xf32>, vector<768x3xf32>, vector<64x3xf32> -> vector<64x3xf32>
    %c0_8 = arith.constant 0 : index
    %c0_9 = arith.constant 0 : index
    %8 = vector.load %arg5[%c0_8, %c0_9] : memref<1x3xf32, #tpu.memory_space<vmem>>, vector<1x3xf32>
    %9 = vector.broadcast %8 : vector<1x3xf32> to vector<64x3xf32>
    %10 = arith.addf %7, %9 : vector<64x3xf32>
    %11 = tpu.iota {dimensions = array<i32: 1>} : vector<64x3xi32>
    %c1_i32 = arith.constant 1 : i32
    %12 = vector.broadcast %c1_i32 : i32 to vector<64x3xi32>
    %13 = arith.cmpi slt, %11, %12 : vector<64x3xi32>
    %14 = arith.negf %10 : vector<64x3xf32>
    %15 = math.exp %14 : vector<64x3xf32>
    %cst_10 = arith.constant 1.000000e+00 : f32
    %16 = vector.broadcast %cst_10 : f32 to vector<64x3xf32>
    %17 = arith.addf %16, %15 : vector<64x3xf32>
    %18 = arith.divf %16, %17 : vector<64x3xf32>
    %19 = arith.select %13, %18, %10 : vector<64x3xi1>, vector<64x3xf32>
    %c0_11 = arith.constant 0 : index
    %c0_12 = arith.constant 0 : index
    %20 = vector.load %arg6[%c0_11, %c0_12] : memref<64x3xf32, #tpu.memory_space<vmem>>, vector<64x3xf32>
    tpu.vector_store %arg6[%c0_11, %c0_12], %19 {strides = array<i32>} : memref<64x3xf32, #tpu.memory_space<vmem>>, vector<64x3xf32>,
    return
  }
  func.func @transform_0(%arg0: i32) -> (i32, i32) {
    %c0_i32 = arith.constant 0 : i32
    %c0_i32_0 = arith.constant 0 : i32
    return %arg0, %c0_i32 : i32, i32
  }
  func.func @transform_1(%arg0: i32) -> (i32, i32) {
    %c0_i32 = arith.constant 0 : i32
    %c0_i32_0 = arith.constant 0 : i32
    %c0_i32_1 = arith.constant 0 : i32
    return %c0_i32, %c0_i32_0 : i32, i32
  }
  func.func @transform_2(%arg0: i32) -> (i32, i32) {
    %c0_i32 = arith.constant 0 : i32
    %c0_i32_0 = arith.constant 0 : i32
    %c0_i32_1 = arith.constant 0 : i32
    return %c0_i32, %c0_i32_0 : i32, i32
  }
  func.func @transform_3(%arg0: i32) -> (i32, i32) {
    %c0_i32 = arith.constant 0 : i32
    %c0_i32_0 = arith.constant 0 : i32
    %c0_i32_1 = arith.constant 0 : i32
    return %c0_i32, %c0_i32_0 : i32, i32
  }
  func.func @transform_4(%arg0: i32) -> (i32, i32) {
    %c0_i32 = arith.constant 0 : i32
    %c0_i32_0 = arith.constant 0 : i32
    %c0_i32_1 = arith.constant 0 : i32
    return %c0_i32, %c0_i32_0 : i32, i32
  }
  func.func @transform_5(%arg0: i32) -> (i32, i32) {
    %c0_i32 = arith.constant 0 : i32
    %c0_i32_0 = arith.constant 0 : i32
    return %arg0, %c0_i32 : i32, i32
  }
}

</mosaic_0001>

<bundles_post_ra>
// kernel: dueling_head_forward.3
= control target key start
LH: loop header
LB: loop body
LE: loop exit
PB: predicated region body
PF: predicated region fallthrough
CT: control target
= control target key end

     0   :  { %v1274_v3 = vmov 0.0   ;;  %vm78_vm0 = vcmask 195584   ;;  %vm919_vm2 = vcmask 23552   ;;  %s1863_s1 = inlined_call_operand.vmem [shape: f32[24,768], index: 1, kind: input, shape index: {}]   ;;  %s1864_s0 = inlined_call_operand.vmem [shape: f32[64,24], index: 0, kind: input, shape index: {}]   ;;  %s1865_s3 = inlined_call_operand.vmem [shape: f32[768,3], index: 3, kind: input, shape index: {}]   ;;  %s1866_s2 = inlined_call_operand.vmem [shape: f32[1,768], index: 2, kind: input, shape index: {}]   ;;  %s1867_s4 = inlined_call_operand.vmem [shape: f32[1,3], index: 4, kind: input, shape index: {}]   ;;  %s1868_s5 = inlined_call_operand.vmem [shape: f32[64,3], index: 5, kind: output, shape index: {}]  }
   0x1   :  { %v29_v0 = vld [vmem:[%s1863_s1 + $0x8] sm:$0xff]  ;;  %v35_v1 = vld [vmem:[%s1863_s1 + $0x38] sm:$0xff]  ;;  %v28_v2 = vld [vmem:[%s1863_s1] sm:$0xff]  ;;  %167 = vmatprep.mubr.f32.mxu0 %v1274_v3  ;;  %280 = vmatprep.mubr.f32.mxu1 %v1274_v3 }
   0x2   :  { %v1133_v4 = vpack.c.bf16 %v35_v1, %v29_v0  ;;  %v34_v5 = vld [vmem:[%s1863_s1 + $0x30] sm:$0xff]  ;;  %v31_v6 = vld [vmem:[%s1863_s1 + $0x18] sm:$0xff]  ;;  %v37_v7 = vld [vmem:[%s1863_s1 + $0x48] sm:$0xff] }
   0x3   :  { %v1135_v8 = vpack.c.bf16 %v34_v5, %v28_v2  ;;  %v1137_v9 = vpack.c.bf16 %v37_v7, %v31_v6  ;;  %v30_v10 = vld [vmem:[%s1863_s1 + $0x10] sm:$0xff]  ;;  %v36_v11 = vld [vmem:[%s1863_s1 + $0x40] sm:$0xff]  ;;  %v41_v12 = vld [vmem:[%s1863_s1 + $0x68] sm:$0xff] }
   0x4   :  { %1134 = vmatprep.subr.bf16.mxu0 %v1133_v4  ;;  %v1139_v13 = vpack.c.bf16 %v36_v11, %v30_v10  ;;  %v43_v14 = vld [vmem:[%s1863_s1 + $0x78] sm:$0xff]  ;;  %v33_v15 = vld [vmem:[%s1863_s1 + $0x28] sm:$0xff]  ;;  %v40_v17 = vld [vmem:[%s1863_s1 + $0x60] sm:$0xff] }
   0x5   :  { %1136 = vmatpush1.bf16.msra.mxu0 %v1135_v8  ;;  %1138 = vmatprep.subr.bf16.mxu1 %v1137_v9  ;;  %v39_v16 = vld [vmem:[%s1863_s1 + $0x58] sm:$0xff]  ;;  %v32_v19 = vld [vmem:[%s1863_s1 + $0x20] sm:$0xff]  ;;  %v38_v20 = vld [vmem:[%s1863_s1 + $0x50] sm:$0xff] }
   0x6   :  { %1140 = vmatpush1.bf16.msra.mxu1 %v1139_v13  ;;  %107 = vmatprep.subr.mxu0 %v41_v12  ;;  %v1141_v18 = vpack.c.bf16 %v39_v16, %v33_v15  ;;  %v1355_v21 = vld [vmem:[%s1864_s0] sm:$0xff]  ;;  %v1143_v22 = vpack.c.bf16 %v38_v20, %v32_v19  ;;  %v42_v23 = vld [vmem:[%s1863_s1 + $0x70] sm:$0xff]  ;;  %v45_v24 = vld [vmem:[%s1863_s1 + $0x88] sm:$0xff] }
   0x7   :  { %220 = vmatprep.subr.mxu1 %v43_v14  ;;  %v458_v25 = vld [vmem:[%s1865_s3 + $0x80] sm:$0xff]  ;;  %v459_v26 = vld [vmem:[%s1865_s3 + $0x88] sm:$0xff]  ;;  %v460_v35 = vld [vmem:[%s1865_s3 + $0x90] sm:$0xff] }
   0x8   :  { %v442_v27 = vld [vmem:[%s1865_s3] sm:$0xff]  ;;  %v443_v28 = vld [vmem:[%s1865_s3 + $0x8] sm:$0xff]  ;;  %v1145_v30 = vpack.c.bf16 %v459_v26, %v458_v25  ;;  %v461_v36 = vld [vmem:[%s1865_s3 + $0x98] sm:$0xff] }
   0x9   :  { %108 = vmatpush1.msra.mxu0 %v40_v17  ;;  %v1380_v29 = vld [vmem:[%s1864_s0 + $0x8] sm:$0xff]  ;;  %v490_v31 = vld [vmem:[%s1865_s3 + $0x180] sm:$0xff]  ;;  %v1147_v37 = vpack.c.bf16 %v443_v28, %v442_v27  ;;  %v1149_v38 = vpack.c.bf16 %v461_v36, %v460_v35  ;;  %v444_v39 = vld [vmem:[%s1865_s3 + $0x10] sm:$0xff] }
   0xa   :  { %932 = vmatmul.mubr.msk.f32.vlgmr.msra.gmra.mrb[0].mxu0 %vm78_vm0, %v1355_v21  ;;  %1142 = vmatprep.subr.bf16.mxu0 %v1141_v18  ;;  %v491_v32 = vld [vmem:[%s1865_s3 + $0x188] sm:$0xff]  ;;  %v44_v33 = vld [vmem:[%s1863_s1 + $0x80] sm:$0xff]  ;;  %v445_v40 = vld [vmem:[%s1865_s3 + $0x18] sm:$0xff] }
   0xb   :  { %221 = vmatpush1.msra.mxu1 %v42_v23  ;;  %1144 = vmatpush1.bf16.msra.mxu0 %v1143_v22  ;;  %v1177_v34 = vpack.c.bf16 %v491_v32, %v490_v31  ;;  %v1413_v41 = vld [vmem:[%s1864_s0 + $0x10] sm:$0xff]  ;;  %v462_v42 = vld [vmem:[%s1865_s3 + $0xa0] sm:$0xff]  ;;  %v463_v43 = vld [vmem:[%s1865_s3 + $0xa8] sm:$0xff]  ;;  %v1151_v44 = vpack.c.bf16 %v445_v40, %v444_v39 }
   0xc   :  { %940 = vmatmul.mubr.msk.f32.vlgmr.msra.gmra.mrb[0].mxu1 %vm78_vm0, %v1355_v21  ;;  %173 = vmatprep.mubr.f32.mxu0 %v1274_v3  ;;  %v1153_v45 = vpack.c.bf16 %v463_v43, %v462_v42  ;;  %v446_v46 = vld [vmem:[%s1865_s3 + $0x20] sm:$0xff]  ;;  %v447_v47 = vld [vmem:[%s1865_s3 + $0x28] sm:$0xff]  ;;  %v1436_v48 = vld [vmem:[%s1864_s0 + $0x18] sm:$0xff] }
   0xd   :  { %286 = vmatprep.mubr.f32.mxu1 %v1274_v3  ;;  %333 = vmatprep.subr.mxu0 %v45_v24  ;;  %v464_v49 = vld [vmem:[%s1865_s3 + $0xb0] sm:$0xff]  ;;  %v465_v50 = vld [vmem:[%s1865_s3 + $0xb8] sm:$0xff]  ;;  %v1155_v51 = vpack.c.bf16 %v447_v47, %v446_v46  ;;  %v1459_v55 = vld [vmem:[%s1864_s0 + $0x20] sm:$0xff] }
   0xe   :  { %933 = vmatmul.mubr.msk.f32.gmra.mrb[2].mxu0 %vm78_vm0, %v1380_v29  ;;  %1146 = vmatprep.subr.bf16.mxu1 %v1145_v30  ;;  %v1157_v52 = vpack.c.bf16 %v465_v50, %v464_v49  ;;  %v448_v53 = vld [vmem:[%s1865_s3 + $0x30] sm:$0xff]  ;;  %v449_v54 = vld [vmem:[%s1865_s3 + $0x38] sm:$0xff]  ;;  %v466_v56 = vld [vmem:[%s1865_s3 + $0xc0] sm:$0xff] }
   0xf   :  { %179 = vmatprep.mubr.f32.mxu0 %v1274_v3  ;;  %334 = vmatpush1.msra.mxu0 %v44_v33  ;;  %v467_v57 = vld [vmem:[%s1865_s3 + $0xc8] sm:$0xff]  ;;  %v1159_v58 = vpack.c.bf16 %v449_v54, %v448_v53  ;;  %v450_v60 = vld [vmem:[%s1865_s3 + $0x40] sm:$0xff]  ;;  %v468_v63 = vld [vmem:[%s1865_s3 + $0xd0] sm:$0xff] }
  0x10   :  { %941 = vmatmul.mubr.msk.f32.gmra.mrb[2].mxu1 %vm78_vm0, %v1380_v29  ;;  %1178 = vmatprep.subr.bf16.mxu0 %v1177_v34  ;;  %v1161_v59 = vpack.c.bf16 %v467_v57, %v466_v56  ;;  %v451_v61 = vld [vmem:[%s1865_s3 + $0x48] sm:$0xff]  ;;  %v469_v0 = vld [vmem:[%s1865_s3 + $0xd8] sm:$0xff]  ;;  %v452_v4 = vld [vmem:[%s1865_s3 + $0x50] sm:$0xff] }
  0x11   :  { %292 = vmatprep.mubr.f32.mxu1 %v1274_v3  ;;  %1148 = vmatpush3.bf16.msra.mxu1 %v1147_v37  ;;  %v1482_v62 = vld [vmem:[%s1864_s0 + $0x28] sm:$0xff]  ;;  %v1163_v1 = vpack.c.bf16 %v451_v61, %v450_v60  ;;  %v1165_v2 = vpack.c.bf16 %v469_v0, %v468_v63  ;;  %v453_v5 = vld [vmem:[%s1865_s3 + $0x58] sm:$0xff]  ;;  %v1505_v6 = vld [vmem:[%s1864_s0 + $0x30] sm:$0xff] }
  0x12   :  { %934 = vmatmul.mubr.msk.f32.gmra.mrb[4].mxu0 %vm78_vm0, %v1413_v41  ;;  %1150 = vmatprep.subr.bf16.mxu1 %v1149_v38  ;;  %v470_v7 = vld [vmem:[%s1865_s3 + $0xe0] sm:$0xff]  ;;  %v471_v8 = vld [vmem:[%s1865_s3 + $0xe8] sm:$0xff]  ;;  %v1167_v9 = vpack.c.bf16 %v453_v5, %v452_v4  ;;  %v1528_v13 = vld [vmem:[%s1864_s0 + $0x38] sm:$0xff]  ;;  %v48_v5 = vlaneseq }
  0x13   :  { %185 = vmatprep.mubr.f32.mxu0 %v1274_v3  ;;  %v1169_v10 = vpack.c.bf16 %v471_v8, %v470_v7  ;;  %v454_v11 = vld [vmem:[%s1865_s3 + $0x60] sm:$0xff]  ;;  %v455_v12 = vld [vmem:[%s1865_s3 + $0x68] sm:$0xff]  ;;  %v492_v16 = vld [vmem:[%s1865_s3 + $0x190] sm:$0xff] }
  0x14   :  { %942 = vmatmul.mubr.msk.f32.gmra.mrb[4].mxu1 %vm78_vm0, %v1413_v41  ;;  %v474_v14 = vld [vmem:[%s1865_s3 + $0x100] sm:$0xff]  ;;  %v475_v15 = vld [vmem:[%s1865_s3 + $0x108] sm:$0xff]  ;;  %v493_v17 = vld [vmem:[%s1865_s3 + $0x198] sm:$0xff]  ;;  %v1171_v18 = vpack.c.bf16 %v455_v12, %v454_v11 }
  0x15   :  { %298 = vmatprep.mubr.f32.mxu1 %v1274_v3  ;;  %1152 = vmatpush3.bf16.msra.mxu1 %v1151_v44  ;;  %v1179_v19 = vpack.c.bf16 %v475_v15, %v474_v14  ;;  %v1181_v20 = vpack.c.bf16 %v493_v17, %v492_v16  ;;  %v476_v22 = vld [vmem:[%s1865_s3 + $0x110] sm:$0xff]  ;;  %v477_v23 = vld [vmem:[%s1865_s3 + $0x118] sm:$0xff]  ;;  %v494_v24 = vld [vmem:[%s1865_s3 + $0x1a0] sm:$0xff] }
  0x16   :  { %935 = vmatmul.mubr.msk.f32.gmra.mrb[6].mxu0 %vm78_vm0, %v1436_v48  ;;  %1154 = vmatprep.subr.bf16.mxu1 %v1153_v45  ;;  %v495_v25 = vld [vmem:[%s1865_s3 + $0x1a8] sm:$0xff]  ;;  %v1183_v26 = vpack.c.bf16 %v477_v23, %v476_v22  ;;  %v478_v28 = vld [vmem:[%s1865_s3 + $0x120] sm:$0xff]  ;;  %v496_v31 = vld [vmem:[%s1865_s3 + $0x1b0] sm:$0xff] }
  0x17   :  { %191 = vmatprep.mubr.f32.mxu0 %v1274_v3  ;;  %v1185_v27 = vpack.c.bf16 %v495_v25, %v494_v24  ;;  %v479_v30 = vld [vmem:[%s1865_s3 + $0x128] sm:$0xff]  ;;  %v480_v34 = vld [vmem:[%s1865_s3 + $0x130] sm:$0xff]  ;;  %v481_v35 = vld [vmem:[%s1865_s3 + $0x138] sm:$0xff] }
  0x18   :  { %943 = vmatmul.mubr.msk.f32.gmra.mrb[6].mxu1 %vm78_vm0, %v1436_v48  ;;  %v1187_v32 = vpack.c.bf16 %v479_v30, %v478_v28  ;;  %v498_v36 = vld [vmem:[%s1865_s3 + $0x1c0] sm:$0xff]  ;;  %v1191_v37 = vpack.c.bf16 %v481_v35, %v480_v34  ;;  %v483_v40 = vld [vmem:[%s1865_s3 + $0x148] sm:$0xff]  ;;  %v500_v42 = vld [vmem:[%s1865_s3 + $0x1d0] sm:$0xff] }
  0x19   :  { %304 = vmatprep.mubr.f32.mxu1 %v1274_v3  ;;  %1156 = vmatpush3.bf16.msra.mxu1 %v1155_v51  ;;  %v482_v39 = vld [vmem:[%s1865_s3 + $0x140] sm:$0xff]  ;;  %v484_v45 = vld [vmem:[%s1865_s3 + $0x150] sm:$0xff]  ;;  %v485_v46 = vld [vmem:[%s1865_s3 + $0x158] sm:$0xff] }
  0x1a   :  { %936 = vmatmul.mubr.msk.f32.gmra.mrb[8].mxu0 %vm78_vm0, %v1459_v55  ;;  %1158 = vmatprep.subr.bf16.mxu1 %v1157_v52  ;;  %v1195_v43 = vpack.c.bf16 %v483_v40, %v482_v39  ;;  %v502_v47 = vld [vmem:[%s1865_s3 + $0x1e0] sm:$0xff]  ;;  %v1199_v49 = vpack.c.bf16 %v485_v46, %v484_v45  ;;  %v487_v52 = vld [vmem:[%s1865_s3 + $0x168] sm:$0xff]  ;;  %v472_v54 = vld [vmem:[%s1865_s3 + $0xf0] sm:$0xff] }
  0x1b   :  { %197 = vmatprep.mubr.f32.mxu0 %v1274_v3  ;;  %v486_v51 = vld [vmem:[%s1865_s3 + $0x160] sm:$0xff]  ;;  %v456_v56 = vld [vmem:[%s1865_s3 + $0x70] sm:$0xff]  ;;  %v457_v57 = vld [vmem:[%s1865_s3 + $0x78] sm:$0xff] }
  0x1c   :  { %944 = vmatmul.mubr.msk.f32.gmra.mrb[8].mxu1 %vm78_vm0, %v1459_v55  ;;  %v1203_v53 = vpack.c.bf16 %v487_v52, %v486_v51  ;;  %v505_v60 = vld [vmem:[%s1865_s3 + $0x1f8] sm:$0xff]  ;;  %v1676_v8 = vld [vmem:[%s1866_s2] sm:$0x3f]  ;;  %v507_v16 = vld [vmem:[%s1865_s3 + $0x208] sm:$0xff] }
  0x1d   :  { %310 = vmatprep.mubr.f32.mxu1 %v1274_v3  ;;  %1160 = vmatpush3.bf16.msra.mxu1 %v1159_v58  ;;  %v1175_v58 = vpack.c.bf16 %v457_v57, %v456_v56  ;;  %v489_v63 = vld [vmem:[%s1865_s3 + $0x178] sm:$0xff]  ;;  %v506_v15 = vld [vmem:[%s1865_s3 + $0x200] sm:$0xff]  ;;  %v527_v35 = vld [vmem:[%s1865_s3 + $0x2a8] sm:$0xff] }
  0x1e   :  { %937 = vmatmul.mubr.msk.f32.gmra.mrb[10].mxu0 %vm78_vm0, %v1482_v62  ;;  %1162 = vmatprep.subr.bf16.mxu1 %v1161_v59  ;;  %v504_v59 = vld [vmem:[%s1865_s3 + $0x1f0] sm:$0xff]  ;;  %v1211_v25 = vpack.c.bf16 %v507_v16, %v506_v15  ;;  %v526_v34 = vld [vmem:[%s1865_s3 + $0x2a0] sm:$0xff]  ;;  %v513_v57 = vld [vmem:[%s1865_s3 + $0x238] sm:$0xff] }
  0x1f   :  { %203 = vmatprep.mubr.f32.mxu0 %v1274_v3  ;;  %v1205_v61 = vpack.c.bf16 %v505_v60, %v504_v59  ;;  %v512_v56 = vld [vmem:[%s1865_s3 + $0x230] sm:$0xff]  ;;  %v530_v60 = vld [vmem:[%s1865_s3 + $0x2c0] sm:$0xff] }
  0x20   :  { %945 = vmatmul.mubr.msk.f32.gmra.mrb[10].mxu1 %vm78_vm0, %v1482_v62 }
  0x21   :  { %316 = vmatprep.mubr.f32.mxu1 %v1274_v3  ;;  %1164 = vmatpush3.bf16.msra.mxu1 %v1163_v1  ;;  %v522_v1 = vld [vmem:[%s1865_s3 + $0x280] sm:$0xff] }
  0x22   :  { %938 = vmatmul.mubr.msk.f32.gmra.mrb[12].mxu0 %vm78_vm0, %v1505_v6  ;;  %1166 = vmatprep.subr.bf16.mxu1 %v1165_v2  ;;  %v523_v2 = vld [vmem:[%s1865_s3 + $0x288] sm:$0xff] }
  0x23   :  { %209 = vmatprep.mubr.f32.mxu0 %v1274_v3  ;;  %v1209_v4 = vpack.c.bf16 %v523_v2, %v522_v1  ;;  %v1223_v1 = vpack.c.bf16 %v513_v57, %v512_v56  ;;  %v520_v57 = vld [vmem:[%s1865_s3 + $0x270] sm:$0xff] }
  0x24   :  { %946 = vmatmul.mubr.msk.f32.gmra.mrb[12].mxu1 %vm78_vm0, %v1505_v6 }
  0x25   :  { %322 = vmatprep.mubr.f32.mxu1 %v1274_v3  ;;  %1168 = vmatpush3.bf16.msra.mxu1 %v1167_v9 }
  0x26   :  { %939 = vmatmul.mubr.msk.f32.gmra.mrb[14].mxu0 %vm78_vm0, %v1528_v13  ;;  %1170 = vmatprep.subr.bf16.mxu1 %v1169_v10 }
  0x27   :  { %393 = vmatprep.mubr.f32.mxu0 %v1274_v3 }
  0x28   :  { %947 = vmatmul.mubr.msk.f32.gmra.mrb[14].mxu1 %vm78_vm0, %v1528_v13 }
  0x29   :  { %1172 = vmatpush3.bf16.msra.mxu1 %v1171_v18 }
  0x2a   :  { %948 = vmatmul.mubr.msk.f32.vlgmr.msra.gmra.mrb[16].mxu0 %vm78_vm0, %v1355_v21  ;;  %v497_v21 = vld [vmem:[%s1865_s3 + $0x1b8] sm:$0xff] }
  0x2b   :  { %399 = vmatprep.mubr.f32.mxu0 %v1274_v3  ;;  %1180 = vmatpush3.bf16.msra.mxu0 %v1179_v19  ;;  %v1189_v33 = vpack.c.bf16 %v497_v21, %v496_v31  ;;  %v524_v19 = vld [vmem:[%s1865_s3 + $0x290] sm:$0xff]  ;;  %v509_v21 = vld [vmem:[%s1865_s3 + $0x218] sm:$0xff] }
  0x2c   :  { %1182 = vmatprep.subr.bf16.mxu0 %v1181_v20  ;;  %v525_v20 = vld [vmem:[%s1865_s3 + $0x298] sm:$0xff]  ;;  %v508_v31 = vld [vmem:[%s1865_s3 + $0x210] sm:$0xff] }
  0x2d   :  { %v1213_v30 = vpack.c.bf16 %v525_v20, %v524_v19  ;;  %v533_v19 = vld [vmem:[%s1865_s3 + $0x2d8] sm:$0xff] }
  0x2e   :  { %949 = vmatmul.mubr.msk.f32.gmra.mrb[18].mxu0 %vm78_vm0, %v1380_v29  ;;  %v499_v29 = vld [vmem:[%s1865_s3 + $0x1c8] sm:$0xff] }
  0x2f   :  { %405 = vmatprep.mubr.f32.mxu0 %v1274_v3  ;;  %1184 = vmatpush3.bf16.msra.mxu0 %v1183_v26  ;;  %v1193_v38 = vpack.c.bf16 %v499_v29, %v498_v36 }
  0x30   :  { %1186 = vmatprep.subr.bf16.mxu0 %v1185_v27 }
  0x32   :  { %950 = vmatmul.mubr.msk.f32.gmra.mrb[20].mxu0 %vm78_vm0, %v1413_v41  ;;  %v501_v41 = vld [vmem:[%s1865_s3 + $0x1d8] sm:$0xff] }
  0x33   :  { %411 = vmatprep.mubr.f32.mxu0 %v1274_v3  ;;  %1188 = vmatpush3.bf16.msra.mxu0 %v1187_v32  ;;  %v1197_v44 = vpack.c.bf16 %v501_v41, %v500_v42  ;;  %v1217_v41 = vpack.c.bf16 %v527_v35, %v526_v34  ;;  %v535_v34 = vld [vmem:[%s1865_s3 + $0x2e8] sm:$0xff] }
  0x34   :  { %1190 = vmatprep.subr.bf16.mxu0 %v1189_v33 }
  0x36   :  { %951 = vmatmul.mubr.msk.f32.gmra.mrb[22].mxu0 %vm78_vm0, %v1436_v48  ;;  %v503_v48 = vld [vmem:[%s1865_s3 + $0x1e8] sm:$0xff] }
  0x37   :  { %417 = vmatprep.mubr.f32.mxu0 %v1274_v3  ;;  %1192 = vmatpush3.bf16.msra.mxu0 %v1191_v37  ;;  %v1201_v50 = vpack.c.bf16 %v503_v48, %v502_v47  ;;  %v528_v47 = vld [vmem:[%s1865_s3 + $0x2b0] sm:$0xff]  ;;  %v529_v48 = vld [vmem:[%s1865_s3 + $0x2b8] sm:$0xff] }
  0x38   :  { %1194 = vmatprep.subr.bf16.mxu0 %v1193_v38  ;;  %v1215_v38 = vpack.c.bf16 %v509_v21, %v508_v31  ;;  %v517_v31 = vld [vmem:[%s1865_s3 + $0x258] sm:$0xff] }
  0x3a   :  { %952 = vmatmul.mubr.msk.f32.gmra.mrb[24].mxu0 %vm78_vm0, %v1459_v55 }
  0x3b   :  { %423 = vmatprep.mubr.f32.mxu0 %v1274_v3  ;;  %1196 = vmatpush3.bf16.msra.mxu0 %v1195_v43  ;;  %v510_v43 = vld [vmem:[%s1865_s3 + $0x220] sm:$0xff] }
  0x3c   :  { %1198 = vmatprep.subr.bf16.mxu0 %v1197_v44  ;;  %v511_v44 = vld [vmem:[%s1865_s3 + $0x228] sm:$0xff] }
  0x3d   :  { %v1219_v52 = vpack.c.bf16 %v511_v44, %v510_v43  ;;  %v519_v43 = vld [vmem:[%s1865_s3 + $0x268] sm:$0xff] }
  0x3e   :  { %953 = vmatmul.mubr.msk.f32.gmra.mrb[26].mxu0 %vm78_vm0, %v1482_v62  ;;  %v488_v62 = vld [vmem:[%s1865_s3 + $0x170] sm:$0xff] }
  0x3f   :  { %429 = vmatprep.mubr.f32.mxu0 %v1274_v3  ;;  %1200 = vmatpush3.bf16.msra.mxu0 %v1199_v49  ;;  %v1207_v0 = vpack.c.bf16 %v489_v63, %v488_v62 }
  0x40   :  { %1202 = vmatprep.subr.bf16.mxu0 %v1201_v50 }
  0x42   :  { %954 = vmatmul.mubr.msk.f32.gmra.mrb[28].mxu0 %vm78_vm0, %v1505_v6  ;;  %v1670_v6 = vshrl.u32 %v48_v5, 7 }
  0x43   :  { %435 = vmatprep.mubr.f32.mxu0 %v1274_v3  ;;  %v473_v3 = vld [vmem:[%s1865_s3 + $0xf8] sm:$0xff]  ;;  %1204 = vmatpush3.bf16.msra.mxu0 %v1203_v53 }
  0x44   :  { %v1173_v55 = vpack.c.bf16 %v473_v3, %v472_v54  ;;  %1206 = vmatprep.subr.bf16.mxu0 %v1205_v61  ;;  %v54_v7 = vsub.s32 1, %v1670_v6  ;;  %v50_v9 = vsub.s32 0, %v1670_v6  ;;  %v58_v10 = vsub.s32 2, %v1670_v6  ;;  %v531_v61 = vld [vmem:[%s1865_s3 + $0x2c8] sm:$0xff] }
  0x45   :  { %v62_v11 = vsub.s32 3, %v1670_v6 }
  0x46   :  { %955 = vmatmul.mubr.msk.f32.gmra.mrb[30].mxu0 %vm78_vm0, %v1528_v13  ;;  %1174 = vmatprep.subr.bf16.mxu1 %v1173_v55  ;;  %v1682_v12 = vrot.slane %v1676_v8, %v54_v7  ;;  %v1685_v13 = vrot.slane %v1676_v8, %v50_v9  ;;  %v1688_v14 = vrot.slane %v1676_v8, %v58_v10  ;;  %v514_v10 = vld [vmem:[%s1865_s3 + $0x240] sm:$0xff] }
  0x47   :  { %1176 = vmatpush3.bf16.msra.mxu1 %v1175_v58  ;;  %1208 = vmatpush3.bf16.msra.mxu0 %v1207_v0  ;;  %v1697_v18 = vrot.slane %v1676_v8, %v62_v11  ;;  %v1221_v55 = vpack.c.bf16 %v529_v48, %v528_v47  ;;  %v1225_v9 = vpack.c.bf16 %v531_v61, %v530_v60  ;;  %v515_v11 = vld [vmem:[%s1865_s3 + $0x248] sm:$0xff]  ;;  %v537_v47 = vld [vmem:[%s1865_s3 + $0x2f8] sm:$0xff] }
  0x48   :  { %1210 = vmatprep.subr.bf16.mxu1 %v1209_v4 }
  0xdd   :  { %v169_v17 = vpop.f32.mrb[0].mxu0 }
  0xde   :  { %v171_v22 = vpop.f32.mrb[1].mxu0  ;;  %v170_v26 = vadd.f32 %v169_v17, %v1685_v13  ;;  %v532_v17 = vld [vmem:[%s1865_s3 + $0x2d0] sm:$0xff] }
  0xdf   :  { %v172_v23 = vadd.f32 %v171_v22, %v1682_v12  ;;  %v282_v24 = vpop.f32.mrb[0].mxu1 }
  0xe0   :  { %v283_v27 = vadd.f32 %v282_v24, %v1688_v14  ;;  %v284_v28 = vpop.f32.mrb[1].mxu1  ;;  %v1227_v24 = vpack.c.bf16 %v515_v11, %v514_v10 }
  0xe1   :  { %v285_v32 = vadd.f32 %v284_v28, %v1697_v18  ;;  %v175_v33 = vpop.f32.mrb[2].mxu0  ;;  %609 = vmatprep.mubr.f32.mxu1 %v172_v23  ;;  %v1229_v28 = vpack.c.bf16 %v533_v19, %v532_v17 }
  0xe2   :  { %v177_v36 = vpop.f32.mrb[3].mxu0  ;;  %610 = vmatmul.mubr.f32.vlgmr.msra.gmra.mrb[16].mxu1 %v170_v26  ;;  %v176_v39 = vadd.f32 %v175_v33, %v1685_v13  ;;  %v534_v33 = vld [vmem:[%s1865_s3 + $0x2e0] sm:$0xff] }
  0xe3   :  { %v178_v29 = vadd.f32 %v177_v36, %v1682_v12  ;;  %v288_v37 = vpop.f32.mrb[2].mxu1  ;;  %714 = vmatprep.mubr.f32.mxu0 %v285_v32  ;;  %1212 = vmatpush3.bf16.msra.mxu1 %v1211_v25 }
  0xe4   :  { %v289_v40 = vadd.f32 %v288_v37, %v1688_v14  ;;  %v290_v42 = vpop.f32.mrb[3].mxu1  ;;  %715 = vmatmul.mubr.f32.vlgmr.msra.gmra.mrb[32].mxu0 %v283_v27  ;;  %1214 = vmatprep.subr.bf16.mxu1 %v1213_v30  ;;  %v516_v30 = vld [vmem:[%s1865_s3 + $0x250] sm:$0xff] }
  0xe5   :  { %v291_v45 = vadd.f32 %v290_v42, %v1697_v18  ;;  %v181_v46 = vpop.f32.mrb[4].mxu0  ;;  %614 = vmatprep.mubr.f32.mxu1 %v178_v29  ;;  %v1231_v37 = vpack.c.bf16 %v517_v31, %v516_v30  ;;  %v1233_v42 = vpack.c.bf16 %v535_v34, %v534_v33 }
  0xe6   :  { %v183_v49 = vpop.f32.mrb[5].mxu0  ;;  %615 = vmatmul.mubr.f32.gmra.mrb[18].mxu1 %v176_v39  ;;  %v182_v53 = vadd.f32 %v181_v46, %v1685_v13  ;;  %v536_v46 = vld [vmem:[%s1865_s3 + $0x2f0] sm:$0xff] }
  0xe7   :  { %v184_v50 = vadd.f32 %v183_v49, %v1682_v12  ;;  %v294_v51 = vpop.f32.mrb[4].mxu1  ;;  %719 = vmatprep.mubr.f32.mxu0 %v291_v45  ;;  %1216 = vmatpush3.bf16.msra.mxu1 %v1215_v38  ;;  %v1237_v56 = vpack.c.bf16 %v537_v47, %v536_v46 }
  0xe8   :  { %v295_v54 = vadd.f32 %v294_v51, %v1688_v14  ;;  %v296_v3 = vpop.f32.mrb[5].mxu1  ;;  %720 = vmatmul.mubr.f32.gmra.mrb[34].mxu0 %v289_v40  ;;  %1218 = vmatprep.subr.bf16.mxu1 %v1217_v41  ;;  %v518_v41 = vld [vmem:[%s1865_s3 + $0x260] sm:$0xff] }
  0xe9   :  { %v297_v58 = vadd.f32 %v296_v3, %v1697_v18  ;;  %v187_v59 = vpop.f32.mrb[6].mxu0  ;;  %619 = vmatprep.mubr.f32.mxu1 %v184_v50  ;;  %v1235_v51 = vpack.c.bf16 %v519_v43, %v518_v41  ;;  %v956_v41 = vld [vmem:[%s1867_s4] ss:$0 sm:$0xff] }
  0xea   :  { %v189_v62 = vpop.f32.mrb[7].mxu0  ;;  %620 = vmatmul.mubr.f32.gmra.mrb[20].mxu1 %v182_v53  ;;  %v188_v2 = vadd.f32 %v187_v59, %v1685_v13 }
  0xeb   :  { %v190_v63 = vadd.f32 %v189_v62, %v1682_v12  ;;  %v300_v0 = vpop.f32.mrb[6].mxu1  ;;  %724 = vmatprep.mubr.f32.mxu0 %v297_v58  ;;  %1220 = vmatpush3.bf16.msra.mxu1 %v1219_v52  ;;  %v70_v52 = vsub.s32 5, %v1670_v6  ;;  %v521_v58 = vld [vmem:[%s1865_s3 + $0x278] sm:$0xff] }
  0xec   :  { %v301_v4 = vadd.f32 %v300_v0, %v1688_v14  ;;  %v302_v7 = vpop.f32.mrb[7].mxu1  ;;  %725 = vmatmul.mubr.f32.gmra.mrb[36].mxu0 %v295_v54  ;;  %1222 = vmatprep.subr.bf16.mxu1 %v1221_v55  ;;  %v66_v55 = vsub.s32 4, %v1670_v6  ;;  %v1239_v0 = vpack.c.bf16 %v521_v58, %v520_v57 }
  0xed   :  { %v303_v15 = vadd.f32 %v302_v7, %v1697_v18  ;;  %v193_v16 = vpop.f32.mrb[8].mxu0  ;;  %624 = vmatprep.mubr.f32.mxu1 %v190_v63  ;;  %v71_v6 = vrot.slane %v1676_v8, %v70_v52 }
  0xee   :  { %v195_v20 = vpop.f32.mrb[9].mxu0  ;;  %625 = vmatmul.mubr.f32.gmra.mrb[22].mxu1 %v188_v2  ;;  %v194_v25 = vadd.f32 %v193_v16, %v1685_v13  ;;  %v67_v7 = vrot.slane %v1676_v8, %v66_v55 }
  0xef   :  { %v196_v22 = vadd.f32 %v195_v20, %v1682_v12  ;;  %v306_v23 = vpop.f32.mrb[8].mxu1  ;;  %729 = vmatprep.mubr.f32.mxu0 %v303_v15  ;;  %1224 = vmatpush3.bf16.msra.mxu1 %v1223_v1 }
  0xf0   :  { %v307_v26 = vadd.f32 %v306_v23, %v1688_v14  ;;  %v308_v27 = vpop.f32.mrb[9].mxu1  ;;  %730 = vmatmul.mubr.f32.gmra.mrb[38].mxu0 %v301_v4  ;;  %1226 = vmatprep.subr.bf16.mxu1 %v1225_v9 }
  0xf1   :  { %v309_v21 = vadd.f32 %v308_v27, %v1697_v18  ;;  %v199_v32 = vpop.f32.mrb[10].mxu0  ;;  %629 = vmatprep.mubr.f32.mxu1 %v196_v22 }
  0xf2   :  { %v201_v35 = vpop.f32.mrb[11].mxu0  ;;  %630 = vmatmul.mubr.f32.gmra.mrb[24].mxu1 %v194_v25  ;;  %v200_v38 = vadd.f32 %v199_v32, %v1685_v13 }
  0xf3   :  { %v202_v36 = vadd.f32 %v201_v35, %v1682_v12  ;;  %v312_v29 = vpop.f32.mrb[10].mxu1  ;;  %734 = vmatprep.mubr.f32.mxu0 %v309_v21  ;;  %1228 = vmatpush3.bf16.msra.mxu1 %v1227_v24 }
  0xf4   :  { %v313_v39 = vadd.f32 %v312_v29, %v1688_v14  ;;  %v314_v40 = vpop.f32.mrb[11].mxu1  ;;  %735 = vmatmul.mubr.f32.gmra.mrb[40].mxu0 %v307_v26  ;;  %1230 = vmatprep.subr.bf16.mxu1 %v1229_v28 }
  0xf5   :  { %v315_v44 = vadd.f32 %v314_v40, %v1697_v18  ;;  %v205_v45 = vpop.f32.mrb[12].mxu0  ;;  %634 = vmatprep.mubr.f32.mxu1 %v202_v36 }
  0xf6   :  { %v207_v48 = vpop.f32.mrb[13].mxu0  ;;  %635 = vmatmul.mubr.f32.gmra.mrb[26].mxu1 %v200_v38  ;;  %v206_v53 = vadd.f32 %v205_v45, %v1685_v13 }
  0xf7   :  { %v208_v49 = vadd.f32 %v207_v48, %v1682_v12  ;;  %v318_v50 = vpop.f32.mrb[12].mxu1  ;;  %739 = vmatprep.mubr.f32.mxu0 %v315_v44  ;;  %1232 = vmatpush3.bf16.msra.mxu1 %v1231_v37 }
  0xf8   :  { %v319_v54 = vadd.f32 %v318_v50, %v1688_v14  ;;  %v320_v3 = vpop.f32.mrb[13].mxu1  ;;  %740 = vmatmul.mubr.f32.gmra.mrb[42].mxu0 %v313_v39  ;;  %1234 = vmatprep.subr.bf16.mxu1 %v1233_v42 }
  0xf9   :  { %v321_v59 = vadd.f32 %v320_v3, %v1697_v18  ;;  %v211_v60 = vpop.f32.mrb[14].mxu0  ;;  %639 = vmatprep.mubr.f32.mxu1 %v208_v49 }
  0xfa   :  { %v213_v61 = vpop.f32.mrb[15].mxu0  ;;  %640 = vmatmul.mubr.f32.gmra.mrb[28].mxu1 %v206_v53  ;;  %v212_v1 = vadd.f32 %v211_v60, %v1685_v13 }
  0xfb   :  { %v214_v62 = vadd.f32 %v213_v61, %v1682_v12  ;;  %v324_v63 = vpop.f32.mrb[14].mxu1  ;;  %744 = vmatprep.mubr.f32.mxu0 %v321_v59  ;;  %1236 = vmatpush3.bf16.msra.mxu1 %v1235_v51 }
  0xfc   :  { %v325_v2 = vadd.f32 %v324_v63, %v1688_v14  ;;  %v326_v4 = vpop.f32.mrb[15].mxu1  ;;  %745 = vmatmul.mubr.f32.gmra.mrb[44].mxu0 %v319_v54  ;;  %1238 = vmatprep.subr.bf16.mxu1 %v1237_v56 }
  0xfd   :  { %v327_v9 = vadd.f32 %v326_v4, %v1697_v18  ;;  %v395_v10 = vpop.f32.mrb[16].mxu0  ;;  %644 = vmatprep.mubr.f32.mxu1 %v214_v62 }
  0xfe   :  { %v397_v12 = vpop.f32.mrb[17].mxu0  ;;  %645 = vmatmul.mubr.f32.gmra.mrb[30].mxu1 %v212_v1  ;;  %v396_v15 = vadd.f32 %v395_v10, %v67_v7 }
  0xff   :  { %v398_v11 = vadd.f32 %v397_v12, %v71_v6  ;;  %749 = vmatprep.mubr.f32.mxu0 %v327_v9  ;;  %1240 = vmatpush3.bf16.msra.mxu1 %v1239_v0 }
 0x100   :  { %750 = vmatmul.mubr.f32.gmra.mrb[46].mxu0 %v325_v2 }
 0x101   :  { %v401_v16 = vpop.f32.mrb[18].mxu0  ;;  %819 = vmatprep.mubr.f32.mxu1 %v398_v11 }
 0x102   :  { %v403_v13 = vpop.f32.mrb[19].mxu0  ;;  %820 = vmatmul.mubr.f32.vlgmr.msra.gmra.mrb[32].mxu1 %v396_v15  ;;  %v402_v17 = vadd.f32 %v401_v16, %v67_v7 }
 0x103   :  { %v404_v14 = vadd.f32 %v403_v13, %v71_v6 }
 0x105   :  { %v407_v19 = vpop.f32.mrb[20].mxu0  ;;  %824 = vmatprep.mubr.f32.mxu1 %v404_v14 }
 0x106   :  { %v409_v8 = vpop.f32.mrb[21].mxu0  ;;  %825 = vmatmul.mubr.f32.gmra.mrb[34].mxu1 %v402_v17  ;;  %v408_v20 = vadd.f32 %v407_v19, %v67_v7 }
 0x107   :  { %v410_v18 = vadd.f32 %v409_v8, %v71_v6 }
 0x109   :  { %v413_v22 = vpop.f32.mrb[22].mxu0  ;;  %829 = vmatprep.mubr.f32.mxu1 %v410_v18 }
 0x10a   :  { %v415_v23 = vpop.f32.mrb[23].mxu0  ;;  %830 = vmatmul.mubr.f32.gmra.mrb[36].mxu1 %v408_v20  ;;  %v414_v25 = vadd.f32 %v413_v22, %v67_v7 }
 0x10b   :  { %v416_v24 = vadd.f32 %v415_v23, %v71_v6 }
 0x10d   :  { %v419_v26 = vpop.f32.mrb[24].mxu0  ;;  %834 = vmatprep.mubr.f32.mxu1 %v416_v24 }
 0x10e   :  { %v421_v27 = vpop.f32.mrb[25].mxu0  ;;  %835 = vmatmul.mubr.f32.gmra.mrb[38].mxu1 %v414_v25  ;;  %v420_v30 = vadd.f32 %v419_v26, %v67_v7 }
 0x10f   :  { %v422_v28 = vadd.f32 %v421_v27, %v71_v6 }
 0x111   :  { %v425_v31 = vpop.f32.mrb[26].mxu0  ;;  %839 = vmatprep.mubr.f32.mxu1 %v422_v28 }
 0x112   :  { %v427_v21 = vpop.f32.mrb[27].mxu0  ;;  %840 = vmatmul.mubr.f32.gmra.mrb[40].mxu1 %v420_v30  ;;  %v426_v33 = vadd.f32 %v425_v31, %v67_v7 }
 0x113   :  { %v428_v32 = vadd.f32 %v427_v21, %v71_v6 }
 0x115   :  { %v431_v34 = vpop.f32.mrb[28].mxu0  ;;  %844 = vmatprep.mubr.f32.mxu1 %v428_v32 }
 0x116   :  { %v433_v35 = vpop.f32.mrb[29].mxu0  ;;  %845 = vmatmul.mubr.f32.gmra.mrb[42].mxu1 %v426_v33  ;;  %v432_v29 = vadd.f32 %v431_v34, %v67_v7 }
 0x117   :  { %v434_v36 = vadd.f32 %v433_v35, %v71_v6 }
 0x119   :  { %v437_v37 = vpop.f32.mrb[30].mxu0  ;;  %849 = vmatprep.mubr.f32.mxu1 %v434_v36 }
 0x11a   :  { %v439_v38 = vpop.f32.mrb[31].mxu0  ;;  %850 = vmatmul.mubr.f32.gmra.mrb[44].mxu1 %v432_v29  ;;  %v438_v40 = vadd.f32 %v437_v37, %v67_v7 }
 0x11b   :  { %v440_v39 = vadd.f32 %v439_v38, %v71_v6 }
 0x11d   :  { %854 = vmatprep.mubr.f32.mxu1 %v440_v39 }
 0x11e   :  { %855 = vmatmul.mubr.f32.gmra.mrb[46].mxu1 %v438_v40 }
 0x1b5   :  { %v997_v42 = vpop.f32.mrb[16].mxu1 }
 0x1b6   :  { %v998_v43 = vpop.f32.mrb[17].mxu1 }
 0x1b7   :  { %v999_v44 = vadd.f32 %v998_v43, %v997_v42  ;;  %v1053_v45 = vpop.f32.mrb[32].mxu0 }
 0x1b8   :  { %v1054_v46 = vpop.f32.mrb[33].mxu0 }
 0x1b9   :  { %v612_v47 = vadd.f32 %v999_v44, %v956_v41  ;;  %v1055_v48 = vadd.f32 %v1054_v46, %v1053_v45  ;;  %v1000_v49 = vpop.f32.mrb[18].mxu1 }
 0x1ba   :  { %v1001_v50 = vpop.f32.mrb[19].mxu1 }
 0x1bb   :  { %v717_v51 = vadd.f32 %v1055_v48, %v612_v47  ;;  %v1002_v52 = vadd.f32 %v1001_v50, %v1000_v49  ;;  %v1056_v53 = vpop.f32.mrb[34].mxu0 }
 0x1bc   :  { %v1057_v54 = vpop.f32.mrb[35].mxu0 }
 0x1bd   :  { %v617_v3 = vadd.f32 %v1002_v52, %v956_v41  ;;  %v1058_v55 = vadd.f32 %v1057_v54, %v1056_v53  ;;  %v1003_v56 = vpop.f32.mrb[20].mxu1 }
 0x1be   :  { %v1004_v57 = vpop.f32.mrb[21].mxu1 }
 0x1bf   :  { %v722_v58 = vadd.f32 %v1058_v55, %v617_v3  ;;  %v1005_v59 = vadd.f32 %v1004_v57, %v1003_v56  ;;  %v1059_v60 = vpop.f32.mrb[36].mxu0 }
 0x1c0   :  { %v1060_v61 = vpop.f32.mrb[37].mxu0 }
 0x1c1   :  { %v622_v62 = vadd.f32 %v1005_v59, %v956_v41  ;;  %v1061_v63 = vadd.f32 %v1060_v61, %v1059_v60  ;;  %v1006_v6 = vpop.f32.mrb[22].mxu1 }
 0x1c2   :  { %v1007_v0 = vpop.f32.mrb[23].mxu1 }
 0x1c3   :  { %v727_v1 = vadd.f32 %v1061_v63, %v622_v62  ;;  %v1008_v2 = vadd.f32 %v1007_v0, %v1006_v6  ;;  %v1062_v4 = vpop.f32.mrb[38].mxu0 }
 0x1c4   :  { %v1063_v7 = vpop.f32.mrb[39].mxu0 }
 0x1c5   :  { %v627_v9 = vadd.f32 %v1008_v2, %v956_v41  ;;  %v1064_v10 = vadd.f32 %v1063_v7, %v1062_v4  ;;  %v1009_v12 = vpop.f32.mrb[24].mxu1 }
 0x1c6   :  { %v1010_v11 = vpop.f32.mrb[25].mxu1 }
 0x1c7   :  { %v732_v15 = vadd.f32 %v1064_v10, %v627_v9  ;;  %v1011_v16 = vadd.f32 %v1010_v11, %v1009_v12  ;;  %v1065_v13 = vpop.f32.mrb[40].mxu0 }
 0x1c8   :  { %v1066_v14 = vpop.f32.mrb[41].mxu0 }
 0x1c9   :  { %v632_v17 = vadd.f32 %v1011_v16, %v956_v41  ;;  %v1067_v19 = vadd.f32 %v1066_v14, %v1065_v13  ;;  %v1012_v8 = vpop.f32.mrb[26].mxu1 }
 0x1ca   :  { %v1013_v18 = vpop.f32.mrb[27].mxu1 }
 0x1cb   :  { %v737_v20 = vadd.f32 %v1067_v19, %v632_v17  ;;  %v1014_v22 = vadd.f32 %v1013_v18, %v1012_v8  ;;  %v1068_v23 = vpop.f32.mrb[42].mxu0 }
 0x1cc   :  { %v1069_v24 = vpop.f32.mrb[43].mxu0 }
 0x1cd   :  { %v637_v25 = vadd.f32 %v1014_v22, %v956_v41  ;;  %v1070_v26 = vadd.f32 %v1069_v24, %v1068_v23  ;;  %v1015_v27 = vpop.f32.mrb[28].mxu1 }
 0x1ce   :  { %v1016_v28 = vpop.f32.mrb[29].mxu1 }
 0x1cf   :  { %v742_v30 = vadd.f32 %v1070_v26, %v637_v25  ;;  %v1017_v31 = vadd.f32 %v1016_v28, %v1015_v27  ;;  %v1071_v21 = vpop.f32.mrb[44].mxu0 }
 0x1d0   :  { %v1072_v32 = vpop.f32.mrb[45].mxu0 }
 0x1d1   :  { %v642_v33 = vadd.f32 %v1017_v31, %v956_v41  ;;  %v1073_v34 = vadd.f32 %v1072_v32, %v1071_v21  ;;  %v1018_v35 = vpop.f32.mrb[30].mxu1 }
 0x1d2   :  { %v1019_v36 = vpop.f32.mrb[31].mxu1 }
 0x1d3   :  { %v747_v29 = vadd.f32 %v1073_v34, %v642_v33  ;;  %v1020_v37 = vadd.f32 %v1019_v36, %v1018_v35  ;;  %v1074_v38 = vpop.f32.mrb[46].mxu0 }
 0x1d4   :  { %v1075_v39 = vpop.f32.mrb[47].mxu0 }
 0x1d5   :  { %v647_v40 = vadd.f32 %v1020_v37, %v956_v41  ;;  %v1076_v42 = vadd.f32 %v1075_v39, %v1074_v38  ;;  %v1109_v43 = vpop.f32.mrb[32].mxu1 }
 0x1d6   :  { %v1110_v44 = vpop.f32.mrb[33].mxu1 }
 0x1d7   :  { %v752_v45 = vadd.f32 %v1076_v42, %v647_v40  ;;  %v1111_v46 = vadd.f32 %v1110_v44, %v1109_v43 }
 0x1d9   :  { %v822_v47 = vadd.f32 %v1111_v46, %v717_v51  ;;  %v1112_v48 = vpop.f32.mrb[34].mxu1 }
 0x1da   :  { %v1113_v49 = vpop.f32.mrb[35].mxu1 }
 0x1db   :  { %v957_v50 = vmul.f32 -1.442695, %v822_v47  ;;  %v1114_v52 = vadd.f32 %v1113_v49, %v1112_v48 }
 0x1dd   :  { %1242 = vpow2.f32 %v957_v50  ;;  %v827_v53 = vadd.f32 %v1114_v52, %v722_v58  ;;  %v1115_v54 = vpop.f32.mrb[36].mxu1 }
 0x1de   :  { %v1116_v3 = vpop.f32.mrb[37].mxu1 }
 0x1df   :  { %v958_v55 = vmul.f32 -1.442695, %v827_v53  ;;  %v1117_v56 = vadd.f32 %v1116_v3, %v1115_v54 }
 0x1e1   :  { %1244 = vpow2.f32 %v958_v55  ;;  %v832_v57 = vadd.f32 %v1117_v56, %v727_v1  ;;  %v1118_v59 = vpop.f32.mrb[38].mxu1 }
 0x1e2   :  { %v1119_v41 = vpop.f32.mrb[39].mxu1 }
 0x1e3   :  { %v959_v60 = vmul.f32 -1.442695, %v832_v57  ;;  %v1120_v61 = vadd.f32 %v1119_v41, %v1118_v59 }
 0x1e5   :  { %1246 = vpow2.f32 %v959_v60  ;;  %v837_v62 = vadd.f32 %v1120_v61, %v732_v15  ;;  %v1121_v63 = vpop.f32.mrb[40].mxu1  ;;  %v861_v15 = vand.u32 127, %v48_v5 }
 0x1e6   :  { %v1122_v51 = vpop.f32.mrb[41].mxu1 }
 0x1e7   :  { %v1243_v6 = vpop.eup %1242  ;;  %v960_v0 = vmul.f32 -1.442695, %v837_v62  ;;  %v1123_v2 = vadd.f32 %v1122_v51, %v1121_v63  ;;  %vm862_vm1 = vcmp.lt.s32.totalorder %v861_v15, 1 }
 0x1e8   :  { %v887_v4 = vadd.f32 1.0, %v1243_v6 }
 0x1e9   :  { %1248 = vpow2.f32 %v960_v0  ;;  %v842_v58 = vadd.f32 %v1123_v2, %v737_v20  ;;  %v1124_v7 = vpop.f32.mrb[42].mxu1 }
 0x1ea   :  { %1250 = vrcp.f32 %v887_v4  ;;  %v1125_v9 = vpop.f32.mrb[43].mxu1 }
 0x1eb   :  { %v1245_v10 = vpop.eup %1244  ;;  %v961_v12 = vmul.f32 -1.442695, %v842_v58  ;;  %v1126_v1 = vadd.f32 %v1125_v9, %v1124_v7 }
 0x1ec   :  { %v888_v11 = vadd.f32 1.0, %v1245_v10 }
 0x1ed   :  { %1252 = vpow2.f32 %v961_v12  ;;  %v847_v16 = vadd.f32 %v1126_v1, %v742_v30  ;;  %v1127_v13 = vpop.f32.mrb[44].mxu1 }
 0x1ee   :  { %1254 = vrcp.f32 %v888_v11  ;;  %v1128_v14 = vpop.f32.mrb[45].mxu1 }
 0x1ef   :  { %v1247_v17 = vpop.eup %1246  ;;  %v962_v19 = vmul.f32 -1.442695, %v847_v16  ;;  %v1129_v8 = vadd.f32 %v1128_v14, %v1127_v13 }
 0x1f0   :  { %v889_v18 = vadd.f32 1.0, %v1247_v17 }
 0x1f1   :  { %1256 = vpow2.f32 %v962_v19  ;;  %v852_v20 = vadd.f32 %v1129_v8, %v747_v29  ;;  %v1130_v22 = vpop.f32.mrb[46].mxu1 }
 0x1f2   :  { %1258 = vrcp.f32 %v889_v18  ;;  %v1131_v23 = vpop.f32.mrb[47].mxu1 }
 0x1f3   :  { %v1249_v24 = vpop.eup %1248  ;;  %v963_v25 = vmul.f32 -1.442695, %v852_v20  ;;  %v1132_v26 = vadd.f32 %v1131_v23, %v1130_v22 }
 0x1f4   :  { %v1251_v27 = vpop.eup %1250  ;;  %v890_v28 = vadd.f32 1.0, %v1249_v24 }
 0x1f5   :  { %v911_v5 = vsel %vm862_vm1, %v1251_v27, %v822_v47  ;;  %1260 = vpow2.f32 %v963_v25  ;;  %v857_v30 = vadd.f32 %v1132_v26, %v752_v45 }
 0x1f6   :  { %920 = vst.msk [vmem:[%s1868_s5] sm:$0xff] %vm919_vm2, %v911_v5  ;;  %1262 = vrcp.f32 %v890_v28 }
 0x1f7   :  { %v1253_v31 = vpop.eup %1252  ;;  %v964_v21 = vmul.f32 -1.442695, %v857_v30 }
 0x1f8   :  { %v1255_v32 = vpop.eup %1254  ;;  %v891_v33 = vadd.f32 1.0, %v1253_v31 }
 0x1f9   :  { %v912_v34 = vsel %vm862_vm1, %v1255_v32, %v827_v53  ;;  %1264 = vpow2.f32 %v964_v21 }
 0x1fa   :  { %921 = vst.msk [vmem:[%s1868_s5 + $0x8] sm:$0xff] %vm919_vm2, %v912_v34  ;;  %1266 = vrcp.f32 %v891_v33 }
 0x1fb   :  { %v1257_v35 = vpop.eup %1256 }
 0x1fc   :  { %v1259_v36 = vpop.eup %1258  ;;  %v892_v29 = vadd.f32 1.0, %v1257_v35 }
 0x1fd   :  { %v913_v37 = vsel %vm862_vm1, %v1259_v36, %v832_v57 }
 0x1fe   :  { %922 = vst.msk [vmem:[%s1868_s5 + $0x10] sm:$0xff] %vm919_vm2, %v913_v37  ;;  %1268 = vrcp.f32 %v892_v29 }
 0x1ff   :  { %v1261_v38 = vpop.eup %1260 }
 0x200   :  { %v1263_v39 = vpop.eup %1262  ;;  %v893_v40 = vadd.f32 1.0, %v1261_v38 }
 0x201   :  { %v914_v42 = vsel %vm862_vm1, %v1263_v39, %v837_v62 }
 0x202   :  { %923 = vst.msk [vmem:[%s1868_s5 + $0x18] sm:$0xff] %vm919_vm2, %v914_v42  ;;  %1270 = vrcp.f32 %v893_v40 }
 0x203   :  { %v1265_v43 = vpop.eup %1264 }
 0x204   :  { %v1267_v44 = vpop.eup %1266  ;;  %v894_v45 = vadd.f32 1.0, %v1265_v43 }
 0x205   :  { %v915_v46 = vsel %vm862_vm1, %v1267_v44, %v842_v58 }
 0x206   :  { %924 = vst.msk [vmem:[%s1868_s5 + $0x20] sm:$0xff] %vm919_vm2, %v915_v46  ;;  %1272 = vrcp.f32 %v894_v45 }
 0x208   :  { %v1269_v47 = vpop.eup %1268 }
 0x209   :  { %v916_v48 = vsel %vm862_vm1, %v1269_v47, %v847_v16 }
 0x20a   :  { %925 = vst.msk [vmem:[%s1868_s5 + $0x28] sm:$0xff] %vm919_vm2, %v916_v48 }
 0x20c   :  { %v1271_v49 = vpop.eup %1270 }
 0x20d   :  { %v917_v50 = vsel %vm862_vm1, %v1271_v49, %v852_v20 }
 0x20e   :  { %926 = vst.msk [vmem:[%s1868_s5 + $0x30] sm:$0xff] %vm919_vm2, %v917_v50 }
 0x210   :  { %v1273_v52 = vpop.eup %1272 }
 0x211   :  { %v918_v53 = vsel %vm862_vm1, %v1273_v52, %v857_v30 }
 0x212   :  { %927 = vst.msk [vmem:[%s1868_s5 + $0x38] sm:$0xff] %vm919_vm2, %v918_v53 }

</bundles_post_ra>
